<compile_context>
chip_gen: v6e
topology: v6e:2x2x1
jax: 0.10.0
libtpu: 0.0.40
codegen_flags: <defaults>
</compile_context>

<pallas_src>
import functools

import jax
import jax.numpy as jnp
from jax.experimental import pallas as pl
from jax.experimental.pallas import tpu as pltpu


def _round_up(a: int, b: int) -> int:
    return ((a + b - 1) // b) * b


def _cmd_tile_kernel(x1_ref, x2_ref, o_ref, *, n_moments: int):
    x1 = x1_ref[...]                       # [N1, TD]
    x2 = x2_ref[...]                       # [N2, TD]
    if x1.dtype != jnp.float32:            # skip redundant cast for f32 inputs
        x1 = x1.astype(jnp.float32)
    if x2.dtype != jnp.float32:
        x2 = x2.astype(jnp.float32)

    n1 = x1.shape[0]
    n2 = x2.shape[0]
    td = x1.shape[1]

    ones1 = jnp.ones((1, n1), jnp.float32)
    ones2 = jnp.ones((1, n2), jnp.float32)
    ones_col = jnp.ones((td, 1), jnp.float32)
    inv_n1 = jnp.float32(1.0 / n1)
    inv_n2 = jnp.float32(1.0 / n2)

    def batch_mean(ones_row, x, inv_n):
        # cross-sublane (batch) reduction on the MXU: [1,N] @ [N,TD] -> [1,TD]
        return jnp.dot(ones_row, x, preferred_element_type=jnp.float32) * inv_n

    def sq_norm(d):
        # sum_j d[j]^2 : square on VPU (single [1,TD] row, negligible),
        # lane reduction on the MXU via [1,TD] @ [TD,1] -> [1,1].
        return jnp.dot(d * d, ones_col, preferred_element_type=jnp.float32)

    mx1 = batch_mean(ones1, x1, inv_n1)    # [1, TD]
    mx2 = batch_mean(ones2, x2, inv_n2)

    sx1 = x1 - mx1                         # [N1, TD] centered samples
    sx2 = x2 - mx2

    partials = [sq_norm(mx1 - mx2)]        # moment 1 (means), [1,1]

    # higher central moments k = 2..n_moments with running powers
    p1 = sx1
    p2 = sx2
    for _ in range(2, n_moments + 1):
        p1 = p1 * sx1                      # sx1 ** k, one mul/elem per moment
        p2 = p2 * sx2
        ss1 = batch_mean(ones1, p1, inv_n1)
        ss2 = batch_mean(ones2, p2, inv_n2)
        partials.append(sq_norm(ss1 - ss2))

    # pack the per-moment [1,1] partial sums-of-squares into lanes
    lane = jax.lax.broadcasted_iota(jnp.int32, (1, n_moments), 1)
    acc = jnp.zeros((1, n_moments), jnp.float32)
    for m, p in enumerate(partials):
        acc = acc + jnp.where(lane == m, p, jnp.float32(0.0))

    o_ref[...] = acc.reshape(1, 1, n_moments)


def _choose_tiling(d: int, n1: int, n2: int, itemsize: int):
    """Pick a lane-aligned feature tile that fits VMEM with minimal padding."""
    d_aligned = _round_up(d, 128)
    # Budget against the smallest scoped-VMEM chip (v7x: 32 MiB scoped):
    # keep the two double-buffered input streams around ~8 MiB total.
    bytes_per_col = 2 * (n1 + n2) * itemsize          # x2 for double-buffering
    budget_cols = max(128, (8 * 1024 * 1024) // max(bytes_per_col, 1))
    cap = max(128, min(512, (budget_cols // 128) * 128))
    num_tiles = pl.cdiv(d_aligned, cap)
    # split evenly so no tile carries padding beyond lane alignment
    tile_d = _round_up(pl.cdiv(d_aligned, num_tiles), 128)
    dp = tile_d * num_tiles
    return tile_d, num_tiles, dp


def cmd_pallas(x1: jax.Array, x2: jax.Array, n_moments: int) -> jax.Array:
    """CMD(x1, x2, n_moments) -> scalar float32 (matches the PyTorch forward)."""
    n_moments = int(n_moments)
    assert x1.ndim == 2 and x2.ndim == 2 and x1.shape[1] == x2.shape[1]
    assert n_moments >= 1
    n1, d = x1.shape
    n2, _ = x2.shape

    tile_d, num_tiles, dp = _choose_tiling(d, n1, n2, x1.dtype.itemsize)

    if dp != d:  # zero feature-columns contribute 0 to every moment term
        x1 = jnp.pad(x1, ((0, 0), (0, dp - d)))
        x2 = jnp.pad(x2, ((0, 0), (0, dp - d)))

    partials = pl.pallas_call(
        functools.partial(_cmd_tile_kernel, n_moments=n_moments),
        out_shape=jax.ShapeDtypeStruct((num_tiles, 1, n_moments), jnp.float32),
        grid=(num_tiles,),
        in_specs=[
            pl.BlockSpec((n1, tile_d), lambda i: (0, i)),
            pl.BlockSpec((n2, tile_d), lambda i: (0, i)),
        ],
        out_specs=pl.BlockSpec((1, 1, n_moments), lambda i: (i, 0, 0)),
        compiler_params=pltpu.CompilerParams(
            dimension_semantics=("parallel",)),
    )(x1, x2)

    # finalize: sum partial ssq over feature tiles, then sqrt per moment, sum
    ssq = jnp.sum(partials.reshape(num_tiles, n_moments), axis=0)  # [n_moments]
    return jnp.sum(jnp.sqrt(ssq))


def cmd_reference(x1, x2, n_moments):
    """Pure-JAX reference mirroring the PyTorch module, for verification."""
    x1 = x1.astype(jnp.float32)
    x2 = x2.astype(jnp.float32)
    mx1 = jnp.mean(x1, axis=0)
    mx2 = jnp.mean(x2, axis=0)
    sx1 = x1 - mx1
    sx2 = x2 - mx2

    def matchnorm(a, b):
        return jnp.sqrt(jnp.sum((a - b) ** 2))

    scms = matchnorm(mx1, mx2)
    for k in range(2, n_moments + 1):
        ss1 = jnp.mean(sx1 ** k, axis=0)
        ss2 = jnp.mean(sx2 ** k, axis=0)
        scms = scms + matchnorm(ss1, ss2)
    return scms


if __name__ == "__main__":
    key = jax.random.PRNGKey(0)
    k1, k2, k3, k4 = jax.random.split(key, 4)
    n_moments = 5

    # Case 1: small shapes consistent with the module (single 128-lane tile).
    N, D = 8, 32
    x1 = jax.random.normal(k1, (N, D), dtype=jnp.float32)
    x2 = 0.5 * jax.random.normal(k2, (N, D), dtype=jnp.float32) + 0.1
    out = jax.block_until_ready(cmd_pallas(x1, x2, n_moments))
    ref = cmd_reference(x1, x2, n_moments)
    assert jnp.allclose(out, ref, rtol=1e-4, atol=1e-5), (out, ref)

    # Case 2: unequal batches + multi-tile feature axis (exercises padding,
    # the D-grid, even tile splitting, and the cross-tile partial reduction).
    N1b, N2b, Db = 16, 8, 700
    y1 = jax.random.normal(k3, (N1b, Db), dtype=jnp.float32)
    y2 = 0.7 * jax.random.normal(k4, (N2b, Db), dtype=jnp.float32) - 0.05
    out2 = jax.block_until_ready(cmd_pallas(y1, y2, n_moments))
    ref2 = cmd_reference(y1, y2, n_moments)
    assert jnp.allclose(out2, ref2, rtol=1e-4, atol=1e-5), (out2, ref2)

    print("KERNEL_OK")
</pallas_src>

<mosaic_0001>
module attributes {stable_mosaic.version = 11 : i64} {
  func.func @_cmd_tile_kernel(%arg0: i32, %arg1: memref<8x128xf32, #tpu.memory_space<vmem>>, %arg2: memref<8x128xf32, #tpu.memory_space<vmem>>, %arg3: memref<1x1x5xf32, #tpu.memory_space<vmem>>) attributes {dimension_semantics = [#tpu.dimension_semantics<parallel>], iteration_bounds = array<i64: 1>, scalar_prefetch = 0 : i64, scratch_operands = 0 : i64, tpu.core_type = #tpu.core_type<tc>, window_params = [{transform_indices = @transform_0, window_bounds = array<i64: 8, 128>}, {transform_indices = @transform_1, window_bounds = array<i64: 8, 128>}, {transform_indices = @transform_2, window_bounds = array<i64: 1, 1, 5>}]} {
    %c0 = arith.constant 0 : index
    %c0_0 = arith.constant 0 : index
    %0 = vector.load %arg1[%c0, %c0_0] : memref<8x128xf32, #tpu.memory_space<vmem>>, vector<8x128xf32>
    %c0_1 = arith.constant 0 : index
    %c0_2 = arith.constant 0 : index
    %1 = vector.load %arg2[%c0_1, %c0_2] : memref<8x128xf32, #tpu.memory_space<vmem>>, vector<8x128xf32>
    %cst = arith.constant 1.000000e+00 : f32
    %2 = vector.broadcast %cst : f32 to vector<1x8xf32>
    %cst_3 = arith.constant 1.000000e+00 : f32
    %3 = vector.broadcast %cst_3 : f32 to vector<1x8xf32>
    %cst_4 = arith.constant 1.000000e+00 : f32
    %4 = vector.broadcast %cst_4 : f32 to vector<128x1xf32>
    %cst_5 = arith.constant dense<0.000000e+00> : vector<1x128xf32>
    %5 = tpu.matmul %2, %0, %cst_5 {dimension_numbers = #tpu.dot_dimension_numbers<[1], [0], [0], [1], [0, 0, 1, 1], [], []>} : vector<1x8xf32>, vector<8x128xf32>, vector<1x128xf32> -> vector<1x128xf32>
    %cst_6 = arith.constant 1.250000e-01 : f32
    %6 = vector.broadcast %cst_6 : f32 to vector<1x128xf32>
    %7 = arith.mulf %5, %6 : vector<1x128xf32>
    %cst_7 = arith.constant dense<0.000000e+00> : vector<1x128xf32>
    %8 = tpu.matmul %3, %1, %cst_7 {dimension_numbers = #tpu.dot_dimension_numbers<[1], [0], [0], [1], [0, 0, 1, 1], [], []>} : vector<1x8xf32>, vector<8x128xf32>, vector<1x128xf32> -> vector<1x128xf32>
    %cst_8 = arith.constant 1.250000e-01 : f32
    %9 = vector.broadcast %cst_8 : f32 to vector<1x128xf32>
    %10 = arith.mulf %8, %9 : vector<1x128xf32>
    %11 = vector.broadcast %7 : vector<1x128xf32> to vector<8x128xf32>
    %12 = arith.subf %0, %11 : vector<8x128xf32>
    %13 = vector.broadcast %10 : vector<1x128xf32> to vector<8x128xf32>
    %14 = arith.subf %1, %13 : vector<8x128xf32>
    %15 = arith.subf %7, %10 : vector<1x128xf32>
    %16 = arith.mulf %15, %15 : vector<1x128xf32>
    %cst_9 = arith.constant dense<0.000000e+00> : vector<1x1xf32>
    %17 = tpu.matmul %16, %4, %cst_9 {dimension_numbers = #tpu.dot_dimension_numbers<[1], [0], [0], [1], [0, 0, 1, 1], [], []>} : vector<1x128xf32>, vector<128x1xf32>, vector<1x1xf32> -> vector<1x1xf32>
    %18 = arith.mulf %12, %12 : vector<8x128xf32>
    %19 = arith.mulf %14, %14 : vector<8x128xf32>
    %cst_10 = arith.constant dense<0.000000e+00> : vector<1x128xf32>
    %20 = tpu.matmul %2, %18, %cst_10 {dimension_numbers = #tpu.dot_dimension_numbers<[1], [0], [0], [1], [0, 0, 1, 1], [], []>} : vector<1x8xf32>, vector<8x128xf32>, vector<1x128xf32> -> vector<1x128xf32>
    %cst_11 = arith.constant 1.250000e-01 : f32
    %21 = vector.broadcast %cst_11 : f32 to vector<1x128xf32>
    %22 = arith.mulf %20, %21 : vector<1x128xf32>
    %cst_12 = arith.constant dense<0.000000e+00> : vector<1x128xf32>
    %23 = tpu.matmul %3, %19, %cst_12 {dimension_numbers = #tpu.dot_dimension_numbers<[1], [0], [0], [1], [0, 0, 1, 1], [], []>} : vector<1x8xf32>, vector<8x128xf32>, vector<1x128xf32> -> vector<1x128xf32>
    %cst_13 = arith.constant 1.250000e-01 : f32
    %24 = vector.broadcast %cst_13 : f32 to vector<1x128xf32>
    %25 = arith.mulf %23, %24 : vector<1x128xf32>
    %26 = arith.subf %22, %25 : vector<1x128xf32>
    %27 = arith.mulf %26, %26 : vector<1x128xf32>
    %cst_14 = arith.constant dense<0.000000e+00> : vector<1x1xf32>
    %28 = tpu.matmul %27, %4, %cst_14 {dimension_numbers = #tpu.dot_dimension_numbers<[1], [0], [0], [1], [0, 0, 1, 1], [], []>} : vector<1x128xf32>, vector<128x1xf32>, vector<1x1xf32> -> vector<1x1xf32>
    %29 = arith.mulf %18, %12 : vector<8x128xf32>
    %30 = arith.mulf %19, %14 : vector<8x128xf32>
    %cst_15 = arith.constant dense<0.000000e+00> : vector<1x128xf32>
    %31 = tpu.matmul %2, %29, %cst_15 {dimension_numbers = #tpu.dot_dimension_numbers<[1], [0], [0], [1], [0, 0, 1, 1], [], []>} : vector<1x8xf32>, vector<8x128xf32>, vector<1x128xf32> -> vector<1x128xf32>
    %cst_16 = arith.constant 1.250000e-01 : f32
    %32 = vector.broadcast %cst_16 : f32 to vector<1x128xf32>
    %33 = arith.mulf %31, %32 : vector<1x128xf32>
    %cst_17 = arith.constant dense<0.000000e+00> : vector<1x128xf32>
    %34 = tpu.matmul %3, %30, %cst_17 {dimension_numbers = #tpu.dot_dimension_numbers<[1], [0], [0], [1], [0, 0, 1, 1], [], []>} : vector<1x8xf32>, vector<8x128xf32>, vector<1x128xf32> -> vector<1x128xf32>
    %cst_18 = arith.constant 1.250000e-01 : f32
    %35 = vector.broadcast %cst_18 : f32 to vector<1x128xf32>
    %36 = arith.mulf %34, %35 : vector<1x128xf32>
    %37 = arith.subf %33, %36 : vector<1x128xf32>
    %38 = arith.mulf %37, %37 : vector<1x128xf32>
    %cst_19 = arith.constant dense<0.000000e+00> : vector<1x1xf32>
    %39 = tpu.matmul %38, %4, %cst_19 {dimension_numbers = #tpu.dot_dimension_numbers<[1], [0], [0], [1], [0, 0, 1, 1], [], []>} : vector<1x128xf32>, vector<128x1xf32>, vector<1x1xf32> -> vector<1x1xf32>
    %40 = arith.mulf %29, %12 : vector<8x128xf32>
    %41 = arith.mulf %30, %14 : vector<8x128xf32>
    %cst_20 = arith.constant dense<0.000000e+00> : vector<1x128xf32>
    %42 = tpu.matmul %2, %40, %cst_20 {dimension_numbers = #tpu.dot_dimension_numbers<[1], [0], [0], [1], [0, 0, 1, 1], [], []>} : vector<1x8xf32>, vector<8x128xf32>, vector<1x128xf32> -> vector<1x128xf32>
    %cst_21 = arith.constant 1.250000e-01 : f32
    %43 = vector.broadcast %cst_21 : f32 to vector<1x128xf32>
    %44 = arith.mulf %42, %43 : vector<1x128xf32>
    %cst_22 = arith.constant dense<0.000000e+00> : vector<1x128xf32>
    %45 = tpu.matmul %3, %41, %cst_22 {dimension_numbers = #tpu.dot_dimension_numbers<[1], [0], [0], [1], [0, 0, 1, 1], [], []>} : vector<1x8xf32>, vector<8x128xf32>, vector<1x128xf32> -> vector<1x128xf32>
    %cst_23 = arith.constant 1.250000e-01 : f32
    %46 = vector.broadcast %cst_23 : f32 to vector<1x128xf32>
    %47 = arith.mulf %45, %46 : vector<1x128xf32>
    %48 = arith.subf %44, %47 : vector<1x128xf32>
    %49 = arith.mulf %48, %48 : vector<1x128xf32>
    %cst_24 = arith.constant dense<0.000000e+00> : vector<1x1xf32>
    %50 = tpu.matmul %49, %4, %cst_24 {dimension_numbers = #tpu.dot_dimension_numbers<[1], [0], [0], [1], [0, 0, 1, 1], [], []>} : vector<1x128xf32>, vector<128x1xf32>, vector<1x1xf32> -> vector<1x1xf32>
    %51 = arith.mulf %40, %12 : vector<8x128xf32>
    %52 = arith.mulf %41, %14 : vector<8x128xf32>
    %cst_25 = arith.constant dense<0.000000e+00> : vector<1x128xf32>
    %53 = tpu.matmul %2, %51, %cst_25 {dimension_numbers = #tpu.dot_dimension_numbers<[1], [0], [0], [1], [0, 0, 1, 1], [], []>} : vector<1x8xf32>, vector<8x128xf32>, vector<1x128xf32> -> vector<1x128xf32>
    %cst_26 = arith.constant 1.250000e-01 : f32
    %54 = vector.broadcast %cst_26 : f32 to vector<1x128xf32>
    %55 = arith.mulf %53, %54 : vector<1x128xf32>
    %cst_27 = arith.constant dense<0.000000e+00> : vector<1x128xf32>
    %56 = tpu.matmul %3, %52, %cst_27 {dimension_numbers = #tpu.dot_dimension_numbers<[1], [0], [0], [1], [0, 0, 1, 1], [], []>} : vector<1x8xf32>, vector<8x128xf32>, vector<1x128xf32> -> vector<1x128xf32>
    %cst_28 = arith.constant 1.250000e-01 : f32
    %57 = vector.broadcast %cst_28 : f32 to vector<1x128xf32>
    %58 = arith.mulf %56, %57 : vector<1x128xf32>
    %59 = arith.subf %55, %58 : vector<1x128xf32>
    %60 = arith.mulf %59, %59 : vector<1x128xf32>
    %cst_29 = arith.constant dense<0.000000e+00> : vector<1x1xf32>
    %61 = tpu.matmul %60, %4, %cst_29 {dimension_numbers = #tpu.dot_dimension_numbers<[1], [0], [0], [1], [0, 0, 1, 1], [], []>} : vector<1x128xf32>, vector<128x1xf32>, vector<1x1xf32> -> vector<1x1xf32>
    %62 = tpu.iota {dimensions = array<i32: 1>} : vector<1x5xi32>
    %cst_30 = arith.constant 0.000000e+00 : f32
    %63 = vector.broadcast %cst_30 : f32 to vector<1x5xf32>
    %c0_i32 = arith.constant 0 : i32
    %64 = vector.broadcast %c0_i32 : i32 to vector<1x5xi32>
    %65 = arith.cmpi eq, %62, %64 : vector<1x5xi32>
    %cst_31 = arith.constant 0.000000e+00 : f32
    %66 = vector.shape_cast %17 : vector<1x1xf32> to vector<1x1xf32>
    %67 = vector.broadcast %66 : vector<1x1xf32> to vector<1x5xf32>
    %68 = vector.broadcast %cst_31 : f32 to vector<1x5xf32>
    %69 = arith.select %65, %67, %68 : vector<1x5xi1>, vector<1x5xf32>
    %70 = arith.addf %63, %69 : vector<1x5xf32>
    %c1_i32 = arith.constant 1 : i32
    %71 = vector.broadcast %c1_i32 : i32 to vector<1x5xi32>
    %72 = arith.cmpi eq, %62, %71 : vector<1x5xi32>
    %cst_32 = arith.constant 0.000000e+00 : f32
    %73 = vector.shape_cast %28 : vector<1x1xf32> to vector<1x1xf32>
    %74 = vector.broadcast %73 : vector<1x1xf32> to vector<1x5xf32>
    %75 = vector.broadcast %cst_32 : f32 to vector<1x5xf32>
    %76 = arith.select %72, %74, %75 : vector<1x5xi1>, vector<1x5xf32>
    %77 = arith.addf %70, %76 : vector<1x5xf32>
    %c2_i32 = arith.constant 2 : i32
    %78 = vector.broadcast %c2_i32 : i32 to vector<1x5xi32>
    %79 = arith.cmpi eq, %62, %78 : vector<1x5xi32>
    %cst_33 = arith.constant 0.000000e+00 : f32
    %80 = vector.shape_cast %39 : vector<1x1xf32> to vector<1x1xf32>
    %81 = vector.broadcast %80 : vector<1x1xf32> to vector<1x5xf32>
    %82 = vector.broadcast %cst_33 : f32 to vector<1x5xf32>
    %83 = arith.select %79, %81, %82 : vector<1x5xi1>, vector<1x5xf32>
    %84 = arith.addf %77, %83 : vector<1x5xf32>
    %c3_i32 = arith.constant 3 : i32
    %85 = vector.broadcast %c3_i32 : i32 to vector<1x5xi32>
    %86 = arith.cmpi eq, %62, %85 : vector<1x5xi32>
    %cst_34 = arith.constant 0.000000e+00 : f32
    %87 = vector.shape_cast %50 : vector<1x1xf32> to vector<1x1xf32>
    %88 = vector.broadcast %87 : vector<1x1xf32> to vector<1x5xf32>
    %89 = vector.broadcast %cst_34 : f32 to vector<1x5xf32>
    %90 = arith.select %86, %88, %89 : vector<1x5xi1>, vector<1x5xf32>
    %91 = arith.addf %84, %90 : vector<1x5xf32>
    %c4_i32 = arith.constant 4 : i32
    %92 = vector.broadcast %c4_i32 : i32 to vector<1x5xi32>
    %93 = arith.cmpi eq, %62, %92 : vector<1x5xi32>
    %cst_35 = arith.constant 0.000000e+00 : f32
    %94 = vector.shape_cast %61 : vector<1x1xf32> to vector<1x1xf32>
    %95 = vector.broadcast %94 : vector<1x1xf32> to vector<1x5xf32>
    %96 = vector.broadcast %cst_35 : f32 to vector<1x5xf32>
    %97 = arith.select %93, %95, %96 : vector<1x5xi1>, vector<1x5xf32>
    %98 = arith.addf %91, %97 : vector<1x5xf32>
    %99 = vector.shape_cast %98 : vector<1x5xf32> to vector<1x1x5xf32>
    %c0_36 = arith.constant 0 : index
    %c0_37 = arith.constant 0 : index
    %c0_38 = arith.constant 0 : index
    %100 = vector.load %arg3[%c0_36, %c0_37, %c0_38] : memref<1x1x5xf32, #tpu.memory_space<vmem>>, vector<1x1x5xf32>
    tpu.vector_store %arg3[%c0_36, %c0_37, %c0_38], %99 {strides = array<i32>} : memref<1x1x5xf32, #tpu.memory_space<vmem>>, vector<1x1x5xf32>,
    return
  }
  func.func @transform_0(%arg0: i32) -> (i32, i32) {
    %c0_i32 = arith.constant 0 : i32
    %c0_i32_0 = arith.constant 0 : i32
    return %c0_i32, %arg0 : i32, i32
  }
  func.func @transform_1(%arg0: i32) -> (i32, i32) {
    %c0_i32 = arith.constant 0 : i32
    %c0_i32_0 = arith.constant 0 : i32
    return %c0_i32, %arg0 : i32, i32
  }
  func.func @transform_2(%arg0: i32) -> (i32, i32, i32) {
    %c0_i32 = arith.constant 0 : i32
    %c0_i32_0 = arith.constant 0 : i32
    %c0_i32_1 = arith.constant 0 : i32
    return %arg0, %c0_i32, %c0_i32_0 : i32, i32, i32
  }
}

</mosaic_0001>

<bundles_post_ra>
// kernel: tpu_custom_call.1
= control target key start
LH: loop header
LB: loop body
LE: loop exit
PB: predicated region body
PF: predicated region fallthrough
CT: control target
= control target key end

     0   :  { %7 = vsyncpa [#allocation3], 0  ;;  %s1888_s0 = inlined_call_operand.hbm [shape: f32[8,128], index: 0, kind: input, shape index: {}]   ;;  %s1889_s1 = inlined_call_operand.hbm [shape: f32[8,128], index: 1, kind: input, shape index: {}]   ;;  %s1890_s2 = inlined_call_operand.hbm [shape: f32[1,1,5], index: 2, kind: output, shape index: {}]  }
   0x1   :  { %8 = vsyncpa [#allocation6], 0 }
   0x2   :  { %9 = vsyncpa [#allocation4], 0  ;;  %s1605_s9 = smov [#allocation2]   ;;  %s1606_s11 = smov [#allocation5]  }
   0x3   :  { %s16_s10 = sshll.u32 %s1605_s9, 4  ;;  %s26_s12 = sshll.u32 %s1606_s11, 4  ;;  %s17_s10 = int_to_ptr.vmem [resolvable:$true] %s16_s10  ;;  %s27_s12 = int_to_ptr.vmem [resolvable:$true] %s26_s12 }
   0x4   :  { %s1547_s13 = scalar_lea.vmem %s17_s10, 128  ;;  %p1552_p1 = scmp.lt.s32.totalorder %s17_s10, %s17_s10 }
   0x5   :  { %p1548_p0 = scmp.ne.s32.totalorder %s17_s10, %s1547_s13  ;;  %p1553_p2 = scmp.lt.s32.totalorder %s1547_s13, %s1547_s13 }
   0x7   :  { %p1554_p3 = por %p1553_p2, %p1552_p1 }
   0x9   :  { %p1555_p4 = pnand %p1554_p3, %p1548_p0 }
   0xb   :  { %1558 = shalt.err (!%p1555_p4)
}
   0xc   :  { %19 = dma.hbm_to_vmem [thread:$0]  %s1888_s0, 128, %s17_s10, [#allocation3]  }
   0xd   :  { %s1567_s16 = scalar_lea.vmem %s27_s12, 128  ;;  %p1572_p6 = scmp.lt.s32.totalorder %s27_s12, %s27_s12 }
   0xe   :  { %p1568_p5 = scmp.ne.s32.totalorder %s27_s12, %s1567_s16  ;;  %p1573_p7 = scmp.lt.s32.totalorder %s1567_s16, %s1567_s16 }
  0x10   :  { %p1574_p8 = por %p1573_p7, %p1572_p6 }
  0x12   :  { %p1575_p9 = pnand %p1574_p8, %p1568_p5 }
  0x14   :  { %1578 = shalt.err (!%p1575_p9)
}
  0x15   :  { %29 = dma.hbm_to_vmem [thread:$0]  %s1889_s1, 128, %s27_s12, [#allocation6]  }
  0x16   :  { %1599 = dma.done.wait [#allocation3], 128  }
  0x17   :  { %1600 = vsyncadd [#allocation3], 4294967168 }
  0x18   :  { %1601 = dma.done.wait [#allocation6], 128  }
  0x19   :  { %1602 = vsyncadd [#allocation6], 4294967168  ;;  %v1607_v0 = vmov 0.0   ;;  %vm1608_vm0 = vmmov 0   ;;  %vm38_vm1 = vcmask 64512   ;;  %v36_v1 = vld [vmem:[#allocation2] sm:$0xff]  ;;  %v184_v5 = vlaneseq }
  0x1a   :  { %1305 = vmatprep.subr.mxu0 %v1607_v0  ;;  %1310 = vmatprep.subr.mxu1 %v1607_v0  ;;  %v37_v2 = vld [vmem:[#allocation5] sm:$0xff]  ;;  %v1609_v3 = vmov 1.0   ;;  %v1610_v4 = vmov 0   ;;  %s1611_s0 = smov [#allocation7]   ;;  %vm1172_vm7 = vcmask 32768  }
  0x1b   :  { %1307 = vmatprep.mubr.msk.f32.mxu0 %vm1608_vm0, %v1607_v0  ;;  %1312 = vmatprep.mubr.msk.f32.mxu1 %vm1608_vm0, %v1607_v0  ;;  %v185_v6 = vshrl.u32 %v184_v5, 7  ;;  %s1180_s1 = sshll.u32 %s1611_s0, 4  ;;  %s1181_s1 = int_to_ptr.vmem [resolvable:$true] %s1180_s1 }
  0x1c   :  { %1306 = vmatpush3.msra.mxu0 %v36_v1  ;;  %1311 = vmatpush3.msra.mxu1 %v37_v2  ;;  %s1579_s19 = scalar_lea.vmem %s1181_s1, 16  ;;  %s1583_s20 = scalar_lea.vmem %s1181_s1, 32 }
  0x1d   :  { %1308 = vmatmul.mubr.msk.f32.vlgmr.msra.gmra.mxu0 %vm38_vm1, %v1609_v3  ;;  %1313 = vmatmul.mubr.msk.f32.vlgmr.msra.gmra.mxu1 %vm38_vm1, %v1609_v3  ;;  %v186_v7 = vsub.s32 0, %v185_v6  ;;  %p1580_p10 = scmp.ne.s32.totalorder %s1181_s1, %s1579_s19  ;;  %p1584_p11 = scmp.lt.s32.totalorder %s1181_s1, %s1181_s1 }
  0x1e   :  { %1315 = vmatprep.subr.mxu0 %v1607_v0  ;;  %1347 = vmatprep.mubr.msk.f32.mxu0 %vm1608_vm0, %v1607_v0  ;;  %p1585_p12 = scmp.lt.s32.totalorder %s1583_s20, %s1579_s19 }
  0x1f   :  { %1316 = vmatpush3.msra.mxu0 %v1609_v3  ;;  %1350 = vmatprep.subr.mxu1 %v1607_v0 }
  0x20   :  { %1317 = vmatprep.subr.mxu0 %v1607_v0  ;;  %1352 = vmatprep.mubr.msk.f32.mxu1 %vm1608_vm0, %v1607_v0  ;;  %p1586_p13 = por %p1585_p12, %p1584_p11 }
  0x21   :  { %1318 = vmatpush3.msra.mxu0 %v1609_v3  ;;  %1537 = vset.pattern.permute.xlu0 %v1610_v4 }
  0x22   :  { %1319 = vmatprep.subr.mxu0 %v1607_v0  ;;  %1538 = vset.pattern.permute.xlu1 %v1610_v4  ;;  %p1587_p0 = pnand %p1586_p13, %p1580_p10 }
  0x23   :  { %1320 = vmatpush3.msra.mxu0 %v1609_v3 }
  0x24   :  { %1321 = vmatprep.subr.mxu0 %v1607_v0 }
  0x25   :  { %1322 = vmatpush3.msra.mxu0 %v1609_v3 }
  0x26   :  { %1323 = vmatprep.subr.mxu0 %v1607_v0 }
  0x27   :  { %1324 = vmatpush3.msra.mxu0 %v1609_v3 }
  0x28   :  { %1325 = vmatprep.subr.mxu0 %v1607_v0 }
  0x29   :  { %1326 = vmatpush3.msra.mxu0 %v1609_v3 }
  0x2a   :  { %1327 = vmatprep.subr.mxu0 %v1607_v0 }
  0x2b   :  { %1328 = vmatpush3.msra.mxu0 %v1609_v3 }
  0x2c   :  { %1329 = vmatprep.subr.mxu0 %v1607_v0 }
  0x2d   :  { %1330 = vmatpush3.msra.mxu0 %v1609_v3 }
  0x2e   :  { %1331 = vmatprep.subr.mxu0 %v1607_v0 }
  0x2f   :  { %1332 = vmatpush3.msra.mxu0 %v1609_v3 }
  0x30   :  { %1333 = vmatprep.subr.mxu0 %v1607_v0 }
  0x31   :  { %1334 = vmatpush3.msra.mxu0 %v1609_v3 }
  0x32   :  { %1335 = vmatprep.subr.mxu0 %v1607_v0 }
  0x33   :  { %1336 = vmatpush3.msra.mxu0 %v1609_v3 }
  0x34   :  { %1337 = vmatprep.subr.mxu0 %v1607_v0 }
  0x35   :  { %1338 = vmatpush3.msra.mxu0 %v1609_v3 }
  0x36   :  { %1339 = vmatprep.subr.mxu0 %v1607_v0 }
  0x37   :  { %1340 = vmatpush3.msra.mxu0 %v1609_v3 }
  0x38   :  { %1341 = vmatprep.subr.mxu0 %v1607_v0 }
  0x39   :  { %1342 = vmatpush3.msra.mxu0 %v1609_v3 }
  0x3a   :  { %1343 = vmatprep.subr.mxu0 %v1607_v0 }
  0x3b   :  { %1344 = vmatpush3.msra.mxu0 %v1609_v3 }
  0x3c   :  { %1345 = vmatprep.subr.mxu0 %v1607_v0 }
  0x3d   :  { %1346 = vmatpush3.msra.mxu0 %v1609_v3 }
  0x3e   :  { %1405 = vmatprep.subr.mxu0 %v1607_v0 }
  0xdd   :  { %v108_v8 = vpop.f32.mrf.mxu0  ;;  %v179_v9 = vpop.f32.mrf.mxu1 }
  0xde   :  { %v112_v10 = vmul.f32 0.125, %v108_v8  ;;  %v183_v11 = vmul.f32 0.125, %v179_v9 }
  0xdf   :  { %v1309_v12 = vpop.f32.mrf.mxu0  ;;  %v1314_v13 = vpop.f32.mrf.mxu1 }
  0xe0   :  { %v187_v14 = vrot.slane %v112_v10, %v186_v7  ;;  %v192_v15 = vrot.slane %v183_v11, %v186_v7  ;;  %v194_v16 = vsub.f32 %v112_v10, %v183_v11 }
  0xe2   :  { %v1682_v17 = vsub.f32 %v36_v1, %v187_v14  ;;  %v1684_v18 = vsub.f32 %v37_v2, %v192_v15  ;;  %v195_v19 = vmul.f32 %v194_v16, %v194_v16 }
  0xe4   :  { %1348 = vmatmul.mubr.f32.vlgmr.msra.gmra.mxu0 %v195_v19  ;;  %v266_v20 = vmul.f32 %v1682_v17, %v1682_v17  ;;  %v267_v21 = vmul.f32 %v1684_v18, %v1684_v18 }
  0xe5   :  { %1406 = vmatpush3.msra.mxu0 %v1609_v3  ;;  %1437 = vmatprep.mubr.msk.f32.mxu0 %vm1608_vm0, %v1607_v0 }
  0xe6   :  { %1351 = vmatpush3.msra.mxu1 %v266_v20  ;;  %v1694_v22 = vmul.f32 %v266_v20, %v1682_v17  ;;  %v1697_v23 = vmul.f32 %v267_v21, %v1684_v18  ;;  %1407 = vmatprep.subr.mxu0 %v1607_v0 }
  0xe7   :  { %1353 = vmatmul.mubr.msk.f32.vlgmr.msra.gmra.mxu1 %vm38_vm1, %v1609_v3  ;;  %1355 = vmatprep.subr.mxu1 %v1607_v0 }
  0xe8   :  { %1356 = vmatpush3.msra.mxu1 %v267_v21  ;;  %1357 = vmatprep.mubr.msk.f32.mxu1 %vm1608_vm0, %v1607_v0  ;;  %v1707_v24 = vmul.f32 %v1694_v22, %v1682_v17  ;;  %v1711_v25 = vmul.f32 %v1697_v23, %v1684_v18 }
  0xe9   :  { %1360 = vmatprep.subr.mxu1 %v1607_v0  ;;  %1408 = vmatpush3.msra.mxu0 %v1609_v3 }
  0xea   :  { %1409 = vmatprep.subr.mxu0 %v1607_v0  ;;  %v914_v54 = vmul.f32 %v1707_v24, %v1682_v17  ;;  %v915_v55 = vmul.f32 %v1711_v25, %v1684_v18 }
  0xeb   :  { %1358 = vmatmul.mubr.msk.f32.vlgmr.msra.gmra.mxu1 %vm38_vm1, %v1609_v3  ;;  %1410 = vmatpush3.msra.mxu0 %v1609_v3 }
  0xec   :  { %1361 = vmatpush3.msra.mxu1 %v1609_v3  ;;  %1392 = vmatprep.mubr.msk.f32.mxu1 %vm1608_vm0, %v1607_v0 }
  0xed   :  { %1362 = vmatprep.subr.mxu1 %v1607_v0  ;;  %1411 = vmatprep.subr.mxu0 %v1607_v0 }
  0xee   :  { %1363 = vmatpush3.msra.mxu1 %v1609_v3  ;;  %1412 = vmatpush3.msra.mxu0 %v1609_v3 }
  0xef   :  { %1364 = vmatprep.subr.mxu1 %v1607_v0  ;;  %1413 = vmatprep.subr.mxu0 %v1607_v0 }
  0xf0   :  { %1365 = vmatpush3.msra.mxu1 %v1609_v3  ;;  %1414 = vmatpush3.msra.mxu0 %v1609_v3 }
  0xf1   :  { %1366 = vmatprep.subr.mxu1 %v1607_v0  ;;  %1415 = vmatprep.subr.mxu0 %v1607_v0 }
  0xf2   :  { %1367 = vmatpush3.msra.mxu1 %v1609_v3  ;;  %1416 = vmatpush3.msra.mxu0 %v1609_v3 }
  0xf3   :  { %1368 = vmatprep.subr.mxu1 %v1607_v0  ;;  %1417 = vmatprep.subr.mxu0 %v1607_v0 }
  0xf4   :  { %1369 = vmatpush3.msra.mxu1 %v1609_v3  ;;  %1418 = vmatpush3.msra.mxu0 %v1609_v3 }
  0xf5   :  { %1370 = vmatprep.subr.mxu1 %v1607_v0  ;;  %1419 = vmatprep.subr.mxu0 %v1607_v0 }
  0xf6   :  { %1371 = vmatpush3.msra.mxu1 %v1609_v3  ;;  %1420 = vmatpush3.msra.mxu0 %v1609_v3 }
  0xf7   :  { %1372 = vmatprep.subr.mxu1 %v1607_v0  ;;  %1421 = vmatprep.subr.mxu0 %v1607_v0 }
  0xf8   :  { %1373 = vmatpush3.msra.mxu1 %v1609_v3  ;;  %1422 = vmatpush3.msra.mxu0 %v1609_v3 }
  0xf9   :  { %1374 = vmatprep.subr.mxu1 %v1607_v0  ;;  %1423 = vmatprep.subr.mxu0 %v1607_v0 }
  0xfa   :  { %1375 = vmatpush3.msra.mxu1 %v1609_v3  ;;  %1424 = vmatpush3.msra.mxu0 %v1609_v3 }
  0xfb   :  { %1376 = vmatprep.subr.mxu1 %v1607_v0  ;;  %1425 = vmatprep.subr.mxu0 %v1607_v0 }
  0xfc   :  { %1377 = vmatpush3.msra.mxu1 %v1609_v3  ;;  %1426 = vmatpush3.msra.mxu0 %v1609_v3 }
  0xfd   :  { %1378 = vmatprep.subr.mxu1 %v1607_v0  ;;  %1427 = vmatprep.subr.mxu0 %v1607_v0 }
  0xfe   :  { %1379 = vmatpush3.msra.mxu1 %v1609_v3  ;;  %1428 = vmatpush3.msra.mxu0 %v1609_v3 }
  0xff   :  { %1380 = vmatprep.subr.mxu1 %v1607_v0  ;;  %1429 = vmatprep.subr.mxu0 %v1607_v0 }
 0x100   :  { %1381 = vmatpush3.msra.mxu1 %v1609_v3  ;;  %1430 = vmatpush3.msra.mxu0 %v1609_v3 }
 0x101   :  { %1382 = vmatprep.subr.mxu1 %v1607_v0  ;;  %1431 = vmatprep.subr.mxu0 %v1607_v0 }
 0x102   :  { %1383 = vmatpush3.msra.mxu1 %v1609_v3  ;;  %1432 = vmatpush3.msra.mxu0 %v1609_v3 }
 0x103   :  { %1384 = vmatprep.subr.mxu1 %v1607_v0  ;;  %1433 = vmatprep.subr.mxu0 %v1607_v0 }
 0x104   :  { %1385 = vmatpush3.msra.mxu1 %v1609_v3  ;;  %1434 = vmatpush3.msra.mxu0 %v1609_v3 }
 0x105   :  { %1386 = vmatprep.subr.mxu1 %v1607_v0  ;;  %1435 = vmatprep.subr.mxu0 %v1607_v0 }
 0x106   :  { %1387 = vmatpush3.msra.mxu1 %v1609_v3  ;;  %1436 = vmatpush3.msra.mxu0 %v1609_v3 }
 0x107   :  { %1388 = vmatprep.subr.mxu1 %v1607_v0  ;;  %1495 = vmatprep.subr.mxu0 %v1607_v0 }
 0x108   :  { %1389 = vmatpush3.msra.mxu1 %v1609_v3 }
 0x109   :  { %1390 = vmatprep.subr.mxu1 %v1607_v0 }
 0x10a   :  { %1391 = vmatpush3.msra.mxu1 %v1609_v3 }
 0x10b   :  { %1395 = vmatprep.subr.mxu1 %v1607_v0 }
 0x1a4   :  { %v262_v26 = vpop.f32.mrf.mxu0 }
 0x1a5   :  { %1135 = vperm.xlu0 %1537, %v262_v26  }
 0x1a6   :  { %v1349_v27 = vpop.f32.mrf.mxu0 }
 0x1a7   :  { %v334_v28 = vpop.f32.mrf.mxu1 }
 0x1a8   :  { %v338_v31 = vmul.f32 0.125, %v334_v28 }
 0x1a9   :  { %v1354_v29 = vpop.f32.mrf.mxu1 }
 0x1ab   :  { %v405_v30 = vpop.f32.mrf.mxu1 }
 0x1ac   :  { %v409_v32 = vmul.f32 0.125, %v405_v30 }
 0x1ad   :  { %v1359_v33 = vpop.f32.mrf.mxu1 }
 0x1ae   :  { %v410_v34 = vsub.f32 %v338_v31, %v409_v32 }
 0x1b0   :  { %v411_v35 = vmul.f32 %v410_v34, %v410_v34 }
 0x1b2   :  { %1393 = vmatmul.mubr.f32.vlgmr.msra.gmra.mxu1 %v411_v35 }
 0x1b3   :  { %1396 = vmatpush3.msra.mxu1 %v1694_v22  ;;  %1397 = vmatprep.mubr.msk.f32.mxu1 %vm1608_vm0, %v1607_v0 }
 0x1b4   :  { %1400 = vmatprep.subr.mxu1 %v1607_v0 }
 0x1b6   :  { %1398 = vmatmul.mubr.msk.f32.vlgmr.msra.gmra.mxu1 %vm38_vm1, %v1609_v3 }
 0x1b7   :  { %1401 = vmatpush3.msra.mxu1 %v1697_v23  ;;  %1402 = vmatprep.mubr.msk.f32.mxu1 %vm1608_vm0, %v1607_v0 }
 0x1b8   :  { %1440 = vmatprep.subr.mxu1 %v1607_v0 }
 0x1ba   :  { %1403 = vmatmul.mubr.msk.f32.vlgmr.msra.gmra.mxu1 %vm38_vm1, %v1609_v3 }
 0x1bb   :  { %1441 = vmatpush3.msra.mxu1 %v1707_v24  ;;  %1442 = vmatprep.mubr.msk.f32.mxu1 %vm1608_vm0, %v1607_v0 }
 0x1bc   :  { %1445 = vmatprep.subr.mxu1 %v1607_v0 }
 0x1be   :  { %1443 = vmatmul.mubr.msk.f32.vlgmr.msra.gmra.mxu1 %vm38_vm1, %v1609_v3 }
 0x1bf   :  { %1446 = vmatpush3.msra.mxu1 %v1711_v25  ;;  %1447 = vmatprep.mubr.msk.f32.mxu1 %vm1608_vm0, %v1607_v0 }
 0x1c0   :  { %1450 = vmatprep.subr.mxu1 %v1607_v0 }
 0x1c2   :  { %1448 = vmatmul.mubr.msk.f32.vlgmr.msra.gmra.mxu1 %vm38_vm1, %v1609_v3 }
 0x1c3   :  { %1451 = vmatpush3.msra.mxu1 %v1609_v3  ;;  %1482 = vmatprep.mubr.msk.f32.mxu1 %vm1608_vm0, %v1607_v0 }
 0x1c4   :  { %1452 = vmatprep.subr.mxu1 %v1607_v0 }
 0x1c5   :  { %1453 = vmatpush3.msra.mxu1 %v1609_v3 }
 0x1c6   :  { %1454 = vmatprep.subr.mxu1 %v1607_v0 }
 0x1c7   :  { %1455 = vmatpush3.msra.mxu1 %v1609_v3 }
 0x1c8   :  { %1456 = vmatprep.subr.mxu1 %v1607_v0 }
 0x1c9   :  { %1457 = vmatpush3.msra.mxu1 %v1609_v3 }
 0x1ca   :  { %1458 = vmatprep.subr.mxu1 %v1607_v0 }
 0x1cb   :  { %1459 = vmatpush3.msra.mxu1 %v1609_v3 }
 0x1cc   :  { %1460 = vmatprep.subr.mxu1 %v1607_v0 }
 0x1cd   :  { %1461 = vmatpush3.msra.mxu1 %v1609_v3 }
 0x1ce   :  { %1462 = vmatprep.subr.mxu1 %v1607_v0 }
 0x1cf   :  { %1463 = vmatpush3.msra.mxu1 %v1609_v3 }
 0x1d0   :  { %1464 = vmatprep.subr.mxu1 %v1607_v0 }
 0x1d1   :  { %1465 = vmatpush3.msra.mxu1 %v1609_v3 }
 0x1d2   :  { %1466 = vmatprep.subr.mxu1 %v1607_v0 }
 0x1d3   :  { %1467 = vmatpush3.msra.mxu1 %v1609_v3 }
 0x1d4   :  { %1468 = vmatprep.subr.mxu1 %v1607_v0 }
 0x1d5   :  { %1469 = vmatpush3.msra.mxu1 %v1609_v3 }
 0x1d6   :  { %1470 = vmatprep.subr.mxu1 %v1607_v0 }
 0x1d7   :  { %1471 = vmatpush3.msra.mxu1 %v1609_v3 }
 0x1d8   :  { %1472 = vmatprep.subr.mxu1 %v1607_v0 }
 0x1d9   :  { %1473 = vmatpush3.msra.mxu1 %v1609_v3 }
 0x1da   :  { %1474 = vmatprep.subr.mxu1 %v1607_v0 }
 0x1db   :  { %1475 = vmatpush3.msra.mxu1 %v1609_v3 }
 0x1dc   :  { %1476 = vmatprep.subr.mxu1 %v1607_v0 }
 0x1dd   :  { %1477 = vmatpush3.msra.mxu1 %v1609_v3 }
 0x1de   :  { %1478 = vmatprep.subr.mxu1 %v1607_v0 }
 0x1df   :  { %1479 = vmatpush3.msra.mxu1 %v1609_v3 }
 0x1e0   :  { %1480 = vmatprep.subr.mxu1 %v1607_v0 }
 0x1e1   :  { %1481 = vmatpush3.msra.mxu1 %v1609_v3 }
 0x1e2   :  { %1485 = vmatprep.subr.mxu1 %v1607_v0 }
 0x220   :  { %v1136_v8 = vpop.permute.xlu0 %1135 }
 0x272   :  { %v478_v36 = vpop.f32.mrf.mxu1 }
 0x273   :  { %1143 = vperm.xlu0 %1537, %v478_v36  }
 0x274   :  { %v1394_v37 = vpop.f32.mrf.mxu1 }
 0x276   :  { %v550_v38 = vpop.f32.mrf.mxu1 }
 0x277   :  { %v554_v41 = vmul.f32 0.125, %v550_v38 }
 0x278   :  { %v1399_v39 = vpop.f32.mrf.mxu1 }
 0x27a   :  { %v621_v40 = vpop.f32.mrf.mxu1 }
 0x27b   :  { %v625_v42 = vmul.f32 0.125, %v621_v40 }
 0x27c   :  { %v1404_v43 = vpop.f32.mrf.mxu1 }
 0x27d   :  { %v626_v44 = vsub.f32 %v554_v41, %v625_v42 }
 0x27e   :  { %v766_v45 = vpop.f32.mrf.mxu1 }
 0x27f   :  { %v627_v46 = vmul.f32 %v626_v44, %v626_v44  ;;  %v770_v49 = vmul.f32 0.125, %v766_v45 }
 0x280   :  { %v1444_v47 = vpop.f32.mrf.mxu1 }
 0x281   :  { %1438 = vmatmul.mubr.f32.vlgmr.msra.gmra.mxu0 %v627_v46 }
 0x282   :  { %v837_v48 = vpop.f32.mrf.mxu1  ;;  %1496 = vmatpush3.msra.mxu0 %v1609_v3  ;;  %1527 = vmatprep.mubr.msk.f32.mxu0 %vm1608_vm0, %v1607_v0 }
 0x283   :  { %v841_v50 = vmul.f32 0.125, %v837_v48  ;;  %1497 = vmatprep.subr.mxu0 %v1607_v0 }
 0x284   :  { %v1449_v51 = vpop.f32.mrf.mxu1  ;;  %1498 = vmatpush3.msra.mxu0 %v1609_v3 }
 0x285   :  { %v842_v52 = vsub.f32 %v770_v49, %v841_v50  ;;  %1499 = vmatprep.subr.mxu0 %v1607_v0 }
 0x286   :  { %1500 = vmatpush3.msra.mxu0 %v1609_v3 }
 0x287   :  { %v843_v53 = vmul.f32 %v842_v52, %v842_v52  ;;  %1501 = vmatprep.subr.mxu0 %v1607_v0 }
 0x288   :  { %1502 = vmatpush3.msra.mxu0 %v1609_v3 }
 0x289   :  { %1483 = vmatmul.mubr.f32.vlgmr.msra.gmra.mxu1 %v843_v53  ;;  %1503 = vmatprep.subr.mxu0 %v1607_v0 }
 0x28a   :  { %1486 = vmatpush3.msra.mxu1 %v914_v54  ;;  %1487 = vmatprep.mubr.msk.f32.mxu1 %vm1608_vm0, %v1607_v0 }
 0x28b   :  { %1490 = vmatprep.subr.mxu1 %v1607_v0  ;;  %1504 = vmatpush3.msra.mxu0 %v1609_v3 }
 0x28c   :  { %1505 = vmatprep.subr.mxu0 %v1607_v0 }
 0x28d   :  { %1488 = vmatmul.mubr.msk.f32.vlgmr.msra.gmra.mxu1 %vm38_vm1, %v1609_v3  ;;  %1506 = vmatpush3.msra.mxu0 %v1609_v3 }
 0x28e   :  { %1491 = vmatpush3.msra.mxu1 %v915_v55  ;;  %1492 = vmatprep.mubr.msk.f32.mxu1 %vm1608_vm0, %v1607_v0 }
 0x28f   :  { %1507 = vmatprep.subr.mxu0 %v1607_v0 }
 0x290   :  { %1508 = vmatpush3.msra.mxu0 %v1609_v3 }
 0x291   :  { %1493 = vmatmul.mubr.msk.f32.vlgmr.msra.gmra.mxu1 %vm38_vm1, %v1609_v3  ;;  %1509 = vmatprep.subr.mxu0 %v1607_v0 }
 0x292   :  { %1510 = vmatpush3.msra.mxu0 %v1609_v3 }
 0x293   :  { %1511 = vmatprep.subr.mxu0 %v1607_v0 }
 0x294   :  { %1512 = vmatpush3.msra.mxu0 %v1609_v3 }
 0x295   :  { %1513 = vmatprep.subr.mxu0 %v1607_v0 }
 0x296   :  { %1514 = vmatpush3.msra.mxu0 %v1609_v3 }
 0x297   :  { %1515 = vmatprep.subr.mxu0 %v1607_v0 }
 0x298   :  { %1516 = vmatpush3.msra.mxu0 %v1609_v3 }
 0x299   :  { %1517 = vmatprep.subr.mxu0 %v1607_v0 }
 0x29a   :  { %1518 = vmatpush3.msra.mxu0 %v1609_v3 }
 0x29b   :  { %1519 = vmatprep.subr.mxu0 %v1607_v0 }
 0x29c   :  { %1520 = vmatpush3.msra.mxu0 %v1609_v3 }
 0x29d   :  { %1521 = vmatprep.subr.mxu0 %v1607_v0 }
 0x29e   :  { %1522 = vmatpush3.msra.mxu0 %v1609_v3 }
 0x29f   :  { %1523 = vmatprep.subr.mxu0 %v1607_v0 }
 0x2a0   :  { %1524 = vmatpush3.msra.mxu0 %v1609_v3 }
 0x2a1   :  { %1525 = vmatprep.subr.mxu0 %v1607_v0 }
 0x2a2   :  { %1526 = vmatpush3.msra.mxu0 %v1609_v3  ;;  %v1131_v3 = vand.u32 127, %v184_v5 }
 0x2a4   :  { %vm1140_vm2 = vcmp.eq.s32.totalorder %v1131_v3, 1  ;;  %vm1132_vm3 = vcmp.eq.s32.totalorder %v1131_v3, 0  ;;  %vm1148_vm4 = vcmp.eq.s32.totalorder %v1131_v3, 2  ;;  %vm1156_vm5 = vcmp.eq.s32.totalorder %v1131_v3, 3 }
 0x2a5   :  { %v1138_v13 = vsel %vm1132_vm3, %v1136_v8, 0.0  ;;  %vm1164_vm6 = vcmp.eq.s32.totalorder %v1131_v3, 4 }
 0x2ee   :  { %v1144_v9 = vpop.permute.xlu0 %1143 }
 0x2ef   :  { %v1146_v11 = vsel %vm1140_vm2, %v1144_v9, 0.0 }
 0x2f0   :  { %v1147_v15 = vadd.f32 %v1146_v11, %v1138_v13 }
 0x341   :  { %v694_v56 = vpop.f32.mrf.mxu0 }
 0x342   :  { %1151 = vperm.xlu1 %1538, %v694_v56  }
 0x343   :  { %v1439_v57 = vpop.f32.mrf.mxu0 }
 0x349   :  { %v910_v58 = vpop.f32.mrf.mxu1 }
 0x34a   :  { %1159 = vperm.xlu1 %1538, %v910_v58  }
 0x34b   :  { %v1484_v59 = vpop.f32.mrf.mxu1 }
 0x34d   :  { %v982_v60 = vpop.f32.mrf.mxu1 }
 0x34e   :  { %v986_v63 = vmul.f32 0.125, %v982_v60 }
 0x34f   :  { %v1489_v61 = vpop.f32.mrf.mxu1 }
 0x351   :  { %v1053_v62 = vpop.f32.mrf.mxu1 }
 0x352   :  { %v1057_v1 = vmul.f32 0.125, %v1053_v62 }
 0x353   :  { %v1494_v2 = vpop.f32.mrf.mxu1 }
 0x354   :  { %v1058_v4 = vsub.f32 %v986_v63, %v1057_v1 }
 0x356   :  { %v1059_v6 = vmul.f32 %v1058_v4, %v1058_v4 }
 0x358   :  { %1528 = vmatmul.mubr.f32.vlgmr.msra.gmra.mxu0 %v1059_v6 }
 0x3bd   :  { %v1152_v10 = vpop.permute.xlu1 %1151 }
 0x3be   :  { %v1154_v14 = vsel %vm1148_vm4, %v1152_v10, 0.0 }
 0x3bf   :  { %v1155_v17 = vadd.f32 %v1154_v14, %v1147_v15 }
 0x3c5   :  { %v1160_v12 = vpop.permute.xlu1 %1159 }
 0x3c6   :  { %v1162_v16 = vsel %vm1156_vm5, %v1160_v12, 0.0 }
 0x3c7   :  { %v1163_v18 = vadd.f32 %v1162_v16, %v1155_v17 }
 0x418   :  { %v1126_v7 = vpop.f32.mrf.mxu0 }
 0x419   :  { %1167 = vperm.xlu0 %1537, %v1126_v7  }
 0x41a   :  { %v1529_v0 = vpop.f32.mrf.mxu0 }
 0x494   :  { %v1168_v19 = vpop.permute.xlu0 %1167 }
 0x495   :  { %v1170_v20 = vsel %vm1164_vm6, %v1168_v19, 0.0 }
 0x496   :  { %v1171_v5 = vadd.f32 %v1170_v20, %v1163_v18 }
 0x498   :  { %1173 = vst.msk [vmem:[#allocation7] sm:$0x1] %vm1172_vm7, %v1171_v5 }
 0x499   :  { %1590 = shalt.err (!%p1587_p0)
}
 0x49a   :  { %1183 = dma.vmem_to_hbm [thread:$0]  %s1181_s1, 16, %s1890_s2, [#allocation4]  }
 0x49b   :  { %1603 = dma.done.wait [#allocation4], 16  }
 0x49c   :  { %1604 = vsyncadd [#allocation4], 4294967280 }
 0x49d   :  { %1187 = vsyncpa [#allocation3], 1 }
 0x49e   :  { %1188 = vsyncpa [#allocation6], 1 }
 0x49f   :  { %1189 = vsyncpa [#allocation4], 1 }

</bundles_post_ra>
